<compile_context>
chip_gen: v5e
topology: v5e:2x2
jax: 0.10.0
libtpu: 0.0.40
codegen_flags: <defaults>
</compile_context>

<pallas_src>
import functools

import jax
import jax.numpy as jnp
from jax.experimental import pallas as pl
from jax.experimental.pallas import tpu as pltpu

NEG_BIG = -1e30           # finite "-inf" for masked logit lanes (avoids inf*0 NaN)
HEAD_WIDTH = 128          # fused head output width (value + logits + padding)
MATMUL_DTYPE = jnp.bfloat16


def policy_act_kernel(x_ref, w1_ref, b1_ref, wh_ref, bh_ref, out_ref, *,
                      num_actions):
    # ---- shared feature extractor (actor == critic features) -------------
    # cast after the DMA: x travels HBM->VMEM at its native dtype
    x = x_ref[...].astype(w1_ref.dtype)                              # [TB, Din] bf16
    h = jnp.dot(x, w1_ref[...],
                preferred_element_type=jnp.float32) + b1_ref[...]    # [TB, Hpad] f32
    h = jnp.maximum(h, 0.0)

    # ---- fused critic_linear + dist head: one 128-lane MXU pass ----------
    fused = jnp.dot(h.astype(wh_ref.dtype), wh_ref[...],
                    preferred_element_type=jnp.float32) + bh_ref[...]  # [TB, 128]

    col = jax.lax.broadcasted_iota(jnp.int32, fused.shape, 1)        # [TB, 128]

    # logits live in columns 1 .. num_actions; padded lanes masked to -1e30
    is_logit = (col >= 1) & (col <= num_actions)
    logits = jnp.where(is_logit, fused, NEG_BIG)

    # numerically stable softmax statistics (f32 VPU/EUP math)
    m = jnp.max(logits, axis=-1, keepdims=True)                      # reduce 1
    z = logits - m
    e = jnp.exp(z)               # masked lanes: exp(-~1e30) underflows to exactly 0
    s = jnp.sum(e, axis=-1, keepdims=True)                           # reduce 2
    log_s = jnp.log(s)

    # deterministic action = first argmax (torch argmax tie-break: lowest index)
    is_max = is_logit & (logits == m)
    action_col = jnp.min(jnp.where(is_max, col, HEAD_WIDTH),
                         axis=-1, keepdims=True)                     # reduce 3
    action = (action_col - 1).astype(jnp.float32)                    # exact in f32

    # log-prob of the argmax action: z == 0 at that lane, so logp = -log(s)
    alogp = -log_s

    # entropy = log(s) - sum(e*z)/s  (no full-width probs/logp materialized)
    # NOTE: approx reciprocal (EUP) feeds only the entropy term; error ~1e-4 rel.
    ez = jnp.sum(e * z, axis=-1, keepdims=True)                      # reduce 4
    ent = log_s - ez * pl.reciprocal(s, approx=True)

    # ---- single lane-dense output slab: one unmasked vst stream ----------
    # column 0: value (rides in lane 0 of `fused`, no extraction reduce),
    #        1: action, 2: action_log_prob, 3: entropy
    packed = jnp.where(col == 0, fused,
             jnp.where(col == 1, action,
             jnp.where(col == 2, alogp,
             jnp.where(col == 3, ent, 0.0))))
    out_ref[...] = packed


def prepare_params(params, matmul_dtype=MATMUL_DTYPE):
    """Pad hidden dim to 128, fuse critic+dist heads into one [Hpad,128] weight."""
    w1, b1, wc, bc, wd, bd = params
    d_in, hidden = w1.shape
    num_actions = wd.shape[1]
    assert 1 + num_actions <= HEAD_WIDTH

    h_pad = max(128, ((hidden + 127) // 128) * 128)

    w1p = jnp.zeros((d_in, h_pad), jnp.float32).at[:, :hidden].set(w1)
    b1p = jnp.zeros((1, h_pad), jnp.float32).at[:, :hidden].set(
        b1.reshape(1, hidden))

    whp = jnp.zeros((h_pad, HEAD_WIDTH), jnp.float32)
    whp = whp.at[:hidden, 0:1].set(wc).at[:hidden, 1:1 + num_actions].set(wd)
    bhp = jnp.zeros((1, HEAD_WIDTH), jnp.float32)
    bhp = bhp.at[:, 0:1].set(bc).at[:, 1:1 + num_actions].set(bd)

    return (w1p.astype(matmul_dtype), b1p,
            whp.astype(matmul_dtype), bhp, num_actions)


def policy_act(x_nchw, states, masks, prepared, deterministic=True):
    """Returns (value, action, action_log_probs, states, dist_entropy)."""
    # TODO(synk): only the deterministic (argmax) sampling path is implemented;
    # stochastic categorical sampling would need in-kernel PRNG (pltpu.prng_*).
    del deterministic
    w1p, b1p, whp, bhp, num_actions = prepared
    B = x_nchw.shape[0]
    x = x_nchw.reshape(B, -1)                      # native dtype; cast in-kernel
    d_in = x.shape[1]
    h_pad = w1p.shape[1]

    # ---- batch tile selection --------------------------------------------
    # f32 sublane alignment (8); cap at 256 rows and by a VMEM budget for the
    # double-buffered x block so huge d_in (image obs) still fits scoped VMEM.
    sub = 8
    bytes_per_row = d_in * x.dtype.itemsize
    vmem_rows = max(sub, ((8 << 20) // (2 * bytes_per_row)) // sub * sub)
    TB = int(min(256, max(sub, (B // sub) * sub), vmem_rows))
    # ensure >=2 grid steps when possible so ("parallel",) can split the batch
    # across the two v7x TensorCores (no-op on v5e/v6e single-core chips)
    if B // TB < 2 and TB > sub and B > sub:
        TB = max(sub, ((TB // 2) + sub - 1) // sub * sub)

    # Only pad when B < TB (i.e. B < 8): keeps block <= array, cost is trivial.
    # Otherwise the ragged final block is handled by Pallas masking; its
    # out-of-bounds rows are garbage but row-independent and never read back.
    if B < TB:
        x = jnp.pad(x, ((0, TB - B), (0, 0)))
    n_rows = x.shape[0]
    grid = (pl.cdiv(n_rows, TB),)

    kernel = functools.partial(policy_act_kernel, num_actions=num_actions)

    itemsize = lambda a: jnp.dtype(a.dtype).itemsize
    cost = pl.CostEstimate(
        flops=2 * n_rows * d_in * h_pad + 2 * n_rows * h_pad * HEAD_WIDTH,
        transcendentals=n_rows * (HEAD_WIDTH + 2),
        bytes_accessed=(x.size * itemsize(x) + w1p.size * itemsize(w1p)
                        + b1p.size * 4 + whp.size * itemsize(whp)
                        + bhp.size * 4 + n_rows * HEAD_WIDTH * 4))

    def run(weight_buffer_count):
        if weight_buffer_count is None:
            wspec = lambda shape: pl.BlockSpec(shape, lambda i: (0, 0))
        else:
            mode = pl.Buffered(weight_buffer_count)
            wspec = lambda shape: pl.BlockSpec(shape, lambda i: (0, 0),
                                               pipeline_mode=mode)
        out = pl.pallas_call(
            kernel,
            out_shape=jax.ShapeDtypeStruct((n_rows, HEAD_WIDTH), jnp.float32),
            grid=grid,
            in_specs=[
                pl.BlockSpec((TB, d_in), lambda i: (i, 0)),   # x: tiled over B
                wspec((d_in, h_pad)),                         # W1: resident
                wspec((1, h_pad)),                            # b1: resident
                wspec((h_pad, HEAD_WIDTH)),                   # fused head W
                wspec((1, HEAD_WIDTH)),                       # fused head b
            ],
            out_specs=pl.BlockSpec((TB, HEAD_WIDTH), lambda i: (i, 0)),
            compiler_params=pltpu.CompilerParams(
                dimension_semantics=("parallel",)),
            cost_estimate=cost,
        )(x, w1p, b1p, whp, bhp)
        return out

    # Grid-invariant weights don't need a second pipeline buffer; fall back to
    # default double buffering if this Pallas version rejects pipeline_mode.
    if hasattr(pl, "Buffered"):
        try:
            packed = run(1)
            jax.block_until_ready(packed)
        except Exception:
            packed = run(None)
    else:
        packed = run(None)

    packed = packed[:B]                                             # drop pad rows
    value = packed[:, 0:1]
    action = packed[:, 1:2].astype(jnp.int32)
    alogp = packed[:, 2:3]
    ent = packed[:, 3:4]

    del masks  # non-recurrent policy: states pass through unchanged
    return value, action, alogp, states, ent


def init_params(key, d_in, hidden, num_actions):
    k1, k2, k3 = jax.random.split(key, 3)
    w1 = jax.random.normal(k1, (d_in, hidden), jnp.float32) * 0.02
    b1 = jnp.zeros((1, hidden), jnp.float32)
    wc = jax.random.normal(k2, (hidden, 1), jnp.float32) * 0.1
    bc = jnp.zeros((1, 1), jnp.float32)
    wd = jax.random.normal(k3, (hidden, num_actions), jnp.float32) * 0.1
    bd = jnp.zeros((1, num_actions), jnp.float32)
    return (w1, b1, wc, bc, wd, bd)


def _reference(x_nchw, params, matmul_dtype=MATMUL_DTYPE):
    """Pure-JAX reference using the same matmul precision as the kernel."""
    w1, b1, wc, bc, wd, bd = params
    x = x_nchw.reshape(x_nchw.shape[0], -1).astype(matmul_dtype)
    h = jnp.dot(x, w1.astype(matmul_dtype),
                preferred_element_type=jnp.float32) + b1
    h = jnp.maximum(h, 0.0)
    hb = h.astype(matmul_dtype)
    value = jnp.dot(hb, wc.astype(matmul_dtype),
                    preferred_element_type=jnp.float32) + bc
    logits = jnp.dot(hb, wd.astype(matmul_dtype),
                     preferred_element_type=jnp.float32) + bd
    logp = jax.nn.log_softmax(logits, axis=-1)
    action = jnp.argmax(logits, axis=-1, keepdims=True).astype(jnp.int32)
    alogp = jnp.take_along_axis(logp, action, axis=-1)
    ent = -jnp.sum(jnp.exp(logp) * logp, axis=-1, keepdims=True)
    return value, action, alogp, ent


if __name__ == "__main__":
    key = jax.random.PRNGKey(0)
    k_x, k_p = jax.random.split(key)

    B, C, H, W = 2, 4, 16, 16            # observation: [2, 4, 16, 16]
    HIDDEN, NUM_ACTIONS = 32, 8

    x = jax.random.normal(k_x, (B, C, H, W), jnp.float32)
    states = jnp.zeros((B, HIDDEN), jnp.float32)
    masks = jnp.ones((B, 1), jnp.float32)
    params = init_params(k_p, C * H * W, HIDDEN, NUM_ACTIONS)
    prepared = prepare_params(params)

    value, action, alogp, states_out, ent = policy_act(
        x, states, masks, prepared, deterministic=True)
    jax.block_until_ready((value, action, alogp, states_out, ent))

    v_ref, a_ref, lp_ref, e_ref = _reference(x, params)
    assert jnp.allclose(value, v_ref, atol=2e-3, rtol=2e-3)
    assert jnp.array_equal(action, a_ref)
    assert jnp.allclose(alogp, lp_ref, atol=2e-3, rtol=2e-3)
    assert jnp.allclose(ent, e_ref, atol=2e-3, rtol=2e-3)

    print("KERNEL_OK")
</pallas_src>

<mosaic_0001>
module attributes {stable_mosaic.version = 11 : i64} {
  func.func @policy_act_kernel(%arg0: i32, %arg1: memref<8x1024xf32, #tpu.memory_space<vmem>>, %arg2: memref<1024x128xbf16, #tpu.memory_space<vmem>>, %arg3: memref<1x128xf32, #tpu.memory_space<vmem>>, %arg4: memref<128x128xbf16, #tpu.memory_space<vmem>>, %arg5: memref<1x128xf32, #tpu.memory_space<vmem>>, %arg6: memref<8x128xf32, #tpu.memory_space<vmem>>) attributes {dimension_semantics = [#tpu.dimension_semantics<parallel>], iteration_bounds = array<i64: 1>, scalar_prefetch = 0 : i64, scratch_operands = 0 : i64, tpu.core_type = #tpu.core_type<tc>, window_params = [{transform_indices = @transform_0, window_bounds = array<i64: 8, 1024>}, {pipeline_mode = #tpu.pipeline_mode<synchronous>, transform_indices = @transform_1, window_bounds = array<i64: 1024, 128>}, {pipeline_mode = #tpu.pipeline_mode<synchronous>, transform_indices = @transform_2, window_bounds = array<i64: 1, 128>}, {pipeline_mode = #tpu.pipeline_mode<synchronous>, transform_indices = @transform_3, window_bounds = array<i64: 128, 128>}, {pipeline_mode = #tpu.pipeline_mode<synchronous>, transform_indices = @transform_4, window_bounds = array<i64: 1, 128>}, {transform_indices = @transform_5, window_bounds = array<i64: 8, 128>}]} {
    %c0 = arith.constant 0 : index
    %c0_0 = arith.constant 0 : index
    %0 = vector.load %arg1[%c0, %c0_0] : memref<8x1024xf32, #tpu.memory_space<vmem>>, vector<8x1024xf32>
    %1 = arith.truncf %0 : vector<8x1024xf32> to vector<8x1024xbf16>
    %c0_1 = arith.constant 0 : index
    %c0_2 = arith.constant 0 : index
    %2 = vector.load %arg2[%c0_1, %c0_2] : memref<1024x128xbf16, #tpu.memory_space<vmem>>, vector<1024x128xbf16>
    %cst = arith.constant dense<0.000000e+00> : vector<8x128xf32>
    %3 = tpu.matmul %1, %2, %cst {dimension_numbers = #tpu.dot_dimension_numbers<[1], [0], [0], [1], [0, 0, 1, 1], [], []>} : vector<8x1024xbf16>, vector<1024x128xbf16>, vector<8x128xf32> -> vector<8x128xf32>
    %c0_3 = arith.constant 0 : index
    %c0_4 = arith.constant 0 : index
    %4 = vector.load %arg3[%c0_3, %c0_4] : memref<1x128xf32, #tpu.memory_space<vmem>>, vector<1x128xf32>
    %5 = vector.broadcast %4 : vector<1x128xf32> to vector<8x128xf32>
    %6 = arith.addf %3, %5 : vector<8x128xf32>
    %cst_5 = arith.constant 0.000000e+00 : f32
    %7 = vector.broadcast %cst_5 : f32 to vector<8x128xf32>
    %8 = arith.maximumf %6, %7 : vector<8x128xf32>
    %9 = arith.truncf %8 : vector<8x128xf32> to vector<8x128xbf16>
    %c0_6 = arith.constant 0 : index
    %c0_7 = arith.constant 0 : index
    %10 = vector.load %arg4[%c0_6, %c0_7] : memref<128x128xbf16, #tpu.memory_space<vmem>>, vector<128x128xbf16>
    %cst_8 = arith.constant dense<0.000000e+00> : vector<8x128xf32>
    %11 = tpu.matmul %9, %10, %cst_8 {dimension_numbers = #tpu.dot_dimension_numbers<[1], [0], [0], [1], [0, 0, 1, 1], [], []>} : vector<8x128xbf16>, vector<128x128xbf16>, vector<8x128xf32> -> vector<8x128xf32>
    %c0_9 = arith.constant 0 : index
    %c0_10 = arith.constant 0 : index
    %12 = vector.load %arg5[%c0_9, %c0_10] : memref<1x128xf32, #tpu.memory_space<vmem>>, vector<1x128xf32>
    %13 = vector.broadcast %12 : vector<1x128xf32> to vector<8x128xf32>
    %14 = arith.addf %11, %13 : vector<8x128xf32>
    %15 = tpu.iota {dimensions = array<i32: 1>} : vector<8x128xi32>
    %c1_i32 = arith.constant 1 : i32
    %16 = vector.broadcast %c1_i32 : i32 to vector<8x128xi32>
    %17 = arith.cmpi sge, %15, %16 : vector<8x128xi32>
    %c8_i32 = arith.constant 8 : i32
    %18 = vector.broadcast %c8_i32 : i32 to vector<8x128xi32>
    %19 = arith.cmpi sle, %15, %18 : vector<8x128xi32>
    %20 = arith.andi %17, %19 : vector<8x128xi1>
    %cst_11 = arith.constant -1.000000e+30 : f32
    %21 = vector.broadcast %cst_11 : f32 to vector<8x128xf32>
    %22 = arith.select %20, %14, %21 : vector<8x128xi1>, vector<8x128xf32>
    %cst_12 = arith.constant dense<0xFF800000> : vector<8xf32>
    %23 = vector.multi_reduction <maximumf>, %22, %cst_12 [1] : vector<8x128xf32> to vector<8xf32>
    %24 = vector.shape_cast %23 : vector<8xf32> to vector<8x1xf32>
    %25 = vector.broadcast %24 : vector<8x1xf32> to vector<8x128xf32>
    %26 = arith.subf %22, %25 : vector<8x128xf32>
    %27 = math.exp %26 : vector<8x128xf32>
    %cst_13 = arith.constant dense<0.000000e+00> : vector<8xf32>
    %28 = vector.multi_reduction <add>, %27, %cst_13 [1] : vector<8x128xf32> to vector<8xf32>
    %29 = vector.shape_cast %28 : vector<8xf32> to vector<8x1xf32>
    %30 = math.log %29 : vector<8x1xf32>
    %31 = vector.broadcast %24 : vector<8x1xf32> to vector<8x128xf32>
    %32 = arith.cmpf oeq, %22, %31 : vector<8x128xf32>
    %33 = arith.andi %20, %32 : vector<8x128xi1>
    %c128_i32 = arith.constant 128 : i32
    %34 = vector.broadcast %c128_i32 : i32 to vector<8x128xi32>
    %35 = arith.select %33, %15, %34 : vector<8x128xi1>, vector<8x128xi32>
    %cst_14 = arith.constant dense<2147483647> : vector<8xi32>
    %36 = vector.multi_reduction <minsi>, %35, %cst_14 [1] : vector<8x128xi32> to vector<8xi32>
    %37 = vector.shape_cast %36 : vector<8xi32> to vector<8x1xi32>
    %c1_i32_15 = arith.constant 1 : i32
    %38 = vector.broadcast %c1_i32_15 : i32 to vector<8x1xi32>
    %39 = arith.subi %37, %38 : vector<8x1xi32>
    %40 = arith.sitofp %39 : vector<8x1xi32> to vector<8x1xf32>
    %cst_16 = arith.constant 0.000000e+00 : f32
    %41 = vector.broadcast %cst_16 : f32 to vector<8x1xf32>
    %42 = arith.subf %41, %30 : vector<8x1xf32>
    %43 = arith.mulf %27, %26 : vector<8x128xf32>
    %cst_17 = arith.constant dense<0.000000e+00> : vector<8xf32>
    %44 = vector.multi_reduction <add>, %43, %cst_17 [1] : vector<8x128xf32> to vector<8xf32>
    %45 = vector.shape_cast %44 : vector<8xf32> to vector<8x1xf32>
    %46 = tpu.reciprocal %29 {approx = true} : vector<8x1xf32> -> vector<8x1xf32>
    %47 = arith.mulf %45, %46 : vector<8x1xf32>
    %48 = arith.subf %30, %47 : vector<8x1xf32>
    %c0_i32 = arith.constant 0 : i32
    %49 = vector.broadcast %c0_i32 : i32 to vector<8x128xi32>
    %50 = arith.cmpi eq, %15, %49 : vector<8x128xi32>
    %c1_i32_18 = arith.constant 1 : i32
    %51 = vector.broadcast %c1_i32_18 : i32 to vector<8x128xi32>
    %52 = arith.cmpi eq, %15, %51 : vector<8x128xi32>
    %c2_i32 = arith.constant 2 : i32
    %53 = vector.broadcast %c2_i32 : i32 to vector<8x128xi32>
    %54 = arith.cmpi eq, %15, %53 : vector<8x128xi32>
    %c3_i32 = arith.constant 3 : i32
    %55 = vector.broadcast %c3_i32 : i32 to vector<8x128xi32>
    %56 = arith.cmpi eq, %15, %55 : vector<8x128xi32>
    %cst_19 = arith.constant 0.000000e+00 : f32
    %57 = vector.shape_cast %48 : vector<8x1xf32> to vector<8x1xf32>
    %58 = vector.broadcast %57 : vector<8x1xf32> to vector<8x128xf32>
    %59 = vector.broadcast %cst_19 : f32 to vector<8x128xf32>
    %60 = arith.select %56, %58, %59 : vector<8x128xi1>, vector<8x128xf32>
    %61 = vector.shape_cast %42 : vector<8x1xf32> to vector<8x1xf32>
    %62 = vector.broadcast %61 : vector<8x1xf32> to vector<8x128xf32>
    %63 = arith.select %54, %62, %60 : vector<8x128xi1>, vector<8x128xf32>
    %64 = vector.shape_cast %40 : vector<8x1xf32> to vector<8x1xf32>
    %65 = vector.broadcast %64 : vector<8x1xf32> to vector<8x128xf32>
    %66 = arith.select %52, %65, %63 : vector<8x128xi1>, vector<8x128xf32>
    %67 = arith.select %50, %14, %66 : vector<8x128xi1>, vector<8x128xf32>
    %c0_20 = arith.constant 0 : index
    %c0_21 = arith.constant 0 : index
    %68 = vector.load %arg6[%c0_20, %c0_21] : memref<8x128xf32, #tpu.memory_space<vmem>>, vector<8x128xf32>
    tpu.vector_store %arg6[%c0_20, %c0_21], %67 {strides = array<i32>} : memref<8x128xf32, #tpu.memory_space<vmem>>, vector<8x128xf32>,
    return
  }
  func.func @transform_0(%arg0: i32) -> (i32, i32) {
    %c0_i32 = arith.constant 0 : i32
    %c0_i32_0 = arith.constant 0 : i32
    return %arg0, %c0_i32 : i32, i32
  }
  func.func @transform_1(%arg0: i32) -> (i32, i32) {
    %c0_i32 = arith.constant 0 : i32
    %c0_i32_0 = arith.constant 0 : i32
    %c0_i32_1 = arith.constant 0 : i32
    return %c0_i32, %c0_i32_0 : i32, i32
  }
  func.func @transform_2(%arg0: i32) -> (i32, i32) {
    %c0_i32 = arith.constant 0 : i32
    %c0_i32_0 = arith.constant 0 : i32
    %c0_i32_1 = arith.constant 0 : i32
    return %c0_i32, %c0_i32_0 : i32, i32
  }
  func.func @transform_3(%arg0: i32) -> (i32, i32) {
    %c0_i32 = arith.constant 0 : i32
    %c0_i32_0 = arith.constant 0 : i32
    %c0_i32_1 = arith.constant 0 : i32
    return %c0_i32, %c0_i32_0 : i32, i32
  }
  func.func @transform_4(%arg0: i32) -> (i32, i32) {
    %c0_i32 = arith.constant 0 : i32
    %c0_i32_0 = arith.constant 0 : i32
    %c0_i32_1 = arith.constant 0 : i32
    return %c0_i32, %c0_i32_0 : i32, i32
  }
  func.func @transform_5(%arg0: i32) -> (i32, i32) {
    %c0_i32 = arith.constant 0 : i32
    %c0_i32_0 = arith.constant 0 : i32
    return %arg0, %c0_i32 : i32, i32
  }
}

module attributes {stable_mosaic.version = 11 : i64} {
  func.func @policy_act_kernel(%arg0: i32, %arg1: memref<8x1024xf32, #tpu.memory_space<vmem>>, %arg2: memref<1024x128xbf16, #tpu.memory_space<vmem>>, %arg3: memref<1x128xf32, #tpu.memory_space<vmem>>, %arg4: memref<128x128xbf16, #tpu.memory_space<vmem>>, %arg5: memref<1x128xf32, #tpu.memory_space<vmem>>, %arg6: memref<8x128xf32, #tpu.memory_space<vmem>>) attributes {dimension_semantics = [#tpu.dimension_semantics<parallel>], iteration_bounds = array<i64: 1>, scalar_prefetch = 0 : i64, scratch_operands = 0 : i64, tpu.core_type = #tpu.core_type<tc>, window_params = [{transform_indices = @transform_0, window_bounds = array<i64: 8, 1024>}, {pipeline_mode = #tpu.pipeline_mode<synchronous>, transform_indices = @transform_1, window_bounds = array<i64: 1024, 128>}, {pipeline_mode = #tpu.pipeline_mode<synchronous>, transform_indices = @transform_2, window_bounds = array<i64: 1, 128>}, {pipeline_mode = #tpu.pipeline_mode<synchronous>, transform_indices = @transform_3, window_bounds = array<i64: 128, 128>}, {pipeline_mode = #tpu.pipeline_mode<synchronous>, transform_indices = @transform_4, window_bounds = array<i64: 1, 128>}, {transform_indices = @transform_5, window_bounds = array<i64: 8, 128>}]} {
    %c0 = arith.constant 0 : index
    %c0_0 = arith.constant 0 : index
    %0 = vector.load %arg1[%c0, %c0_0] : memref<8x1024xf32, #tpu.memory_space<vmem>>, vector<8x1024xf32>
    %1 = arith.truncf %0 : vector<8x1024xf32> to vector<8x1024xbf16>
    %c0_1 = arith.constant 0 : index
    %c0_2 = arith.constant 0 : index
    %2 = vector.load %arg2[%c0_1, %c0_2] : memref<1024x128xbf16, #tpu.memory_space<vmem>>, vector<1024x128xbf16>
    %cst = arith.constant dense<0.000000e+00> : vector<8x128xf32>
    %3 = tpu.matmul %1, %2, %cst {dimension_numbers = #tpu.dot_dimension_numbers<[1], [0], [0], [1], [0, 0, 1, 1], [], []>} : vector<8x1024xbf16>, vector<1024x128xbf16>, vector<8x128xf32> -> vector<8x128xf32>
    %c0_3 = arith.constant 0 : index
    %c0_4 = arith.constant 0 : index
    %4 = vector.load %arg3[%c0_3, %c0_4] : memref<1x128xf32, #tpu.memory_space<vmem>>, vector<1x128xf32>
    %5 = vector.broadcast %4 : vector<1x128xf32> to vector<8x128xf32>
    %6 = arith.addf %3, %5 : vector<8x128xf32>
    %cst_5 = arith.constant 0.000000e+00 : f32
    %7 = vector.broadcast %cst_5 : f32 to vector<8x128xf32>
    %8 = arith.maximumf %6, %7 : vector<8x128xf32>
    %9 = arith.truncf %8 : vector<8x128xf32> to vector<8x128xbf16>
    %c0_6 = arith.constant 0 : index
    %c0_7 = arith.constant 0 : index
    %10 = vector.load %arg4[%c0_6, %c0_7] : memref<128x128xbf16, #tpu.memory_space<vmem>>, vector<128x128xbf16>
    %cst_8 = arith.constant dense<0.000000e+00> : vector<8x128xf32>
    %11 = tpu.matmul %9, %10, %cst_8 {dimension_numbers = #tpu.dot_dimension_numbers<[1], [0], [0], [1], [0, 0, 1, 1], [], []>} : vector<8x128xbf16>, vector<128x128xbf16>, vector<8x128xf32> -> vector<8x128xf32>
    %c0_9 = arith.constant 0 : index
    %c0_10 = arith.constant 0 : index
    %12 = vector.load %arg5[%c0_9, %c0_10] : memref<1x128xf32, #tpu.memory_space<vmem>>, vector<1x128xf32>
    %13 = vector.broadcast %12 : vector<1x128xf32> to vector<8x128xf32>
    %14 = arith.addf %11, %13 : vector<8x128xf32>
    %15 = tpu.iota {dimensions = array<i32: 1>} : vector<8x128xi32>
    %c1_i32 = arith.constant 1 : i32
    %16 = vector.broadcast %c1_i32 : i32 to vector<8x128xi32>
    %17 = arith.cmpi sge, %15, %16 : vector<8x128xi32>
    %c8_i32 = arith.constant 8 : i32
    %18 = vector.broadcast %c8_i32 : i32 to vector<8x128xi32>
    %19 = arith.cmpi sle, %15, %18 : vector<8x128xi32>
    %20 = arith.andi %17, %19 : vector<8x128xi1>
    %cst_11 = arith.constant -1.000000e+30 : f32
    %21 = vector.broadcast %cst_11 : f32 to vector<8x128xf32>
    %22 = arith.select %20, %14, %21 : vector<8x128xi1>, vector<8x128xf32>
    %cst_12 = arith.constant dense<0xFF800000> : vector<8xf32>
    %23 = vector.multi_reduction <maximumf>, %22, %cst_12 [1] : vector<8x128xf32> to vector<8xf32>
    %24 = vector.shape_cast %23 : vector<8xf32> to vector<8x1xf32>
    %25 = vector.broadcast %24 : vector<8x1xf32> to vector<8x128xf32>
    %26 = arith.subf %22, %25 : vector<8x128xf32>
    %27 = math.exp %26 : vector<8x128xf32>
    %cst_13 = arith.constant dense<0.000000e+00> : vector<8xf32>
    %28 = vector.multi_reduction <add>, %27, %cst_13 [1] : vector<8x128xf32> to vector<8xf32>
    %29 = vector.shape_cast %28 : vector<8xf32> to vector<8x1xf32>
    %30 = math.log %29 : vector<8x1xf32>
    %31 = vector.broadcast %24 : vector<8x1xf32> to vector<8x128xf32>
    %32 = arith.cmpf oeq, %22, %31 : vector<8x128xf32>
    %33 = arith.andi %20, %32 : vector<8x128xi1>
    %c128_i32 = arith.constant 128 : i32
    %34 = vector.broadcast %c128_i32 : i32 to vector<8x128xi32>
    %35 = arith.select %33, %15, %34 : vector<8x128xi1>, vector<8x128xi32>
    %cst_14 = arith.constant dense<2147483647> : vector<8xi32>
    %36 = vector.multi_reduction <minsi>, %35, %cst_14 [1] : vector<8x128xi32> to vector<8xi32>
    %37 = vector.shape_cast %36 : vector<8xi32> to vector<8x1xi32>
    %c1_i32_15 = arith.constant 1 : i32
    %38 = vector.broadcast %c1_i32_15 : i32 to vector<8x1xi32>
    %39 = arith.subi %37, %38 : vector<8x1xi32>
    %40 = arith.sitofp %39 : vector<8x1xi32> to vector<8x1xf32>
    %cst_16 = arith.constant 0.000000e+00 : f32
    %41 = vector.broadcast %cst_16 : f32 to vector<8x1xf32>
    %42 = arith.subf %41, %30 : vector<8x1xf32>
    %43 = arith.mulf %27, %26 : vector<8x128xf32>
    %cst_17 = arith.constant dense<0.000000e+00> : vector<8xf32>
    %44 = vector.multi_reduction <add>, %43, %cst_17 [1] : vector<8x128xf32> to vector<8xf32>
    %45 = vector.shape_cast %44 : vector<8xf32> to vector<8x1xf32>
    %46 = tpu.reciprocal %29 {approx = true} : vector<8x1xf32> -> vector<8x1xf32>
    %47 = arith.mulf %45, %46 : vector<8x1xf32>
    %48 = arith.subf %30, %47 : vector<8x1xf32>
    %c0_i32 = arith.constant 0 : i32
    %49 = vector.broadcast %c0_i32 : i32 to vector<8x128xi32>
    %50 = arith.cmpi eq, %15, %49 : vector<8x128xi32>
    %c1_i32_18 = arith.constant 1 : i32
    %51 = vector.broadcast %c1_i32_18 : i32 to vector<8x128xi32>
    %52 = arith.cmpi eq, %15, %51 : vector<8x128xi32>
    %c2_i32 = arith.constant 2 : i32
    %53 = vector.broadcast %c2_i32 : i32 to vector<8x128xi32>
    %54 = arith.cmpi eq, %15, %53 : vector<8x128xi32>
    %c3_i32 = arith.constant 3 : i32
    %55 = vector.broadcast %c3_i32 : i32 to vector<8x128xi32>
    %56 = arith.cmpi eq, %15, %55 : vector<8x128xi32>
    %cst_19 = arith.constant 0.000000e+00 : f32
    %57 = vector.shape_cast %48 : vector<8x1xf32> to vector<8x1xf32>
    %58 = vector.broadcast %57 : vector<8x1xf32> to vector<8x128xf32>
    %59 = vector.broadcast %cst_19 : f32 to vector<8x128xf32>
    %60 = arith.select %56, %58, %59 : vector<8x128xi1>, vector<8x128xf32>
    %61 = vector.shape_cast %42 : vector<8x1xf32> to vector<8x1xf32>
    %62 = vector.broadcast %61 : vector<8x1xf32> to vector<8x128xf32>
    %63 = arith.select %54, %62, %60 : vector<8x128xi1>, vector<8x128xf32>
    %64 = vector.shape_cast %40 : vector<8x1xf32> to vector<8x1xf32>
    %65 = vector.broadcast %64 : vector<8x1xf32> to vector<8x128xf32>
    %66 = arith.select %52, %65, %63 : vector<8x128xi1>, vector<8x128xf32>
    %67 = arith.select %50, %14, %66 : vector<8x128xi1>, vector<8x128xf32>
    %c0_20 = arith.constant 0 : index
    %c0_21 = arith.constant 0 : index
    %68 = vector.load %arg6[%c0_20, %c0_21] : memref<8x128xf32, #tpu.memory_space<vmem>>, vector<8x128xf32>
    tpu.vector_store %arg6[%c0_20, %c0_21], %67 {strides = array<i32>} : memref<8x128xf32, #tpu.memory_space<vmem>>, vector<8x128xf32>,
    return
  }
  func.func @transform_0(%arg0: i32) -> (i32, i32) {
    %c0_i32 = arith.constant 0 : i32
    %c0_i32_0 = arith.constant 0 : i32
    return %arg0, %c0_i32 : i32, i32
  }
  func.func @transform_1(%arg0: i32) -> (i32, i32) {
    %c0_i32 = arith.constant 0 : i32
    %c0_i32_0 = arith.constant 0 : i32
    %c0_i32_1 = arith.constant 0 : i32
    return %c0_i32, %c0_i32_0 : i32, i32
  }
  func.func @transform_2(%arg0: i32) -> (i32, i32) {
    %c0_i32 = arith.constant 0 : i32
    %c0_i32_0 = arith.constant 0 : i32
    %c0_i32_1 = arith.constant 0 : i32
    return %c0_i32, %c0_i32_0 : i32, i32
  }
  func.func @transform_3(%arg0: i32) -> (i32, i32) {
    %c0_i32 = arith.constant 0 : i32
    %c0_i32_0 = arith.constant 0 : i32
    %c0_i32_1 = arith.constant 0 : i32
    return %c0_i32, %c0_i32_0 : i32, i32
  }
  func.func @transform_4(%arg0: i32) -> (i32, i32) {
    %c0_i32 = arith.constant 0 : i32
    %c0_i32_0 = arith.constant 0 : i32
    %c0_i32_1 = arith.constant 0 : i32
    return %c0_i32, %c0_i32_0 : i32, i32
  }
  func.func @transform_5(%arg0: i32) -> (i32, i32) {
    %c0_i32 = arith.constant 0 : i32
    %c0_i32_0 = arith.constant 0 : i32
    return %arg0, %c0_i32 : i32, i32
  }
}

</mosaic_0001>

<bundles_post_ra>
// kernel: tpu_custom_call.1
= control target key start
LH: loop header
LB: loop body
LE: loop exit
PB: predicated region body
PF: predicated region fallthrough
CT: control target
= control target key end

     0   :  { %10 = vsyncpa [#allocation3], 0  ;;  %s1384_s0 = inlined_call_operand.hbm [shape: f32[8,1024], index: 0, kind: input, shape index: {}]   ;;  %s1385_s1 = inlined_call_operand.hbm [shape: bf16[1024,128], index: 1, kind: input, shape index: {}]   ;;  %s1386_s2 = inlined_call_operand.vmem [shape: f32[1,128], index: 2, kind: input, shape index: {}]   ;;  %s1387_s3 = inlined_call_operand.hbm [shape: bf16[128,128], index: 3, kind: input, shape index: {}]   ;;  %s1388_s4 = inlined_call_operand.vmem [shape: f32[1,128], index: 4, kind: input, shape index: {}]   ;;  %s1389_s5 = inlined_call_operand.hbm [shape: f32[8,128], index: 5, kind: output, shape index: {}]  }
   0x1   :  { %11 = vsyncpa [#allocation6], 0  ;;  %s28_s20 = sshll.u32 %s1385_s1, 4  ;;  %s29_s20 = int_to_ptr.hbm [resolvable:$true] %s28_s20 }
   0x2   :  { %12 = vsyncpa [#allocation4], 0  ;;  %s1330_s21 = smov [#allocation5]   ;;  %s18_s25 = sshll.u32 %s1384_s0, 4  ;;  %s19_s25 = int_to_ptr.hbm [resolvable:$true] %s18_s25 }
   0x3   :  { %s30_s22 = sshll.u32 %s1330_s21, 4  ;;  %s1331_s26 = smov 64   ;;  %s31_s22 = int_to_ptr.vmem [resolvable:$true] %s30_s22 }
   0x4   :  { %s1332_s27 = smov 4   ;;  %s1333_s28 = smov [#allocation2]  }
   0x5   :  { %36 = dma.hbm_to_vmem [thread:$0]  %s29_s20, 8192, %s31_s22, [#allocation6], %s1331_s26, %s1331_s26, %s1332_s27  }
   0x6   :  { %s20_s29 = sshll.u32 %s1333_s28, 4  ;;  %s43_s7 = sshll.u32 %s1387_s3, 4  ;;  %s21_s29 = int_to_ptr.vmem [resolvable:$true] %s20_s29  ;;  %s44_s7 = int_to_ptr.hbm [resolvable:$true] %s43_s7 }
   0x7   :  { %23 = dma.hbm_to_vmem [thread:$0]  %s19_s25, 1024, %s21_s29, [#allocation3]  }
   0x8   :  { %s1334_s1 = smov [#allocation7]  }
   0x9   :  { %s45_s8 = sshll.u32 %s1334_s1, 4  ;;  %s46_s8 = int_to_ptr.vmem [resolvable:$true] %s45_s8 }
   0xa   :  { %51 = dma.hbm_to_vmem [thread:$0]  %s44_s7, 1024, %s46_s8, [#allocation6], %s1331_s26, %s1331_s26, %s1332_s27  }
   0xb   :  { %1324 = dma.done.wait [#allocation3], 1024  }
   0xc   :  { %1325 = vsyncadd [#allocation3], 4294966272 }
   0xd   :  { %1326 = dma.done.wait [#allocation6], 9216  }
   0xe   :  { %1327 = vsyncadd [#allocation6], 4294958080  ;;  %v1149_v0 = vld [vmem:[#allocation5 + $0x38] sm:$0xff]  ;;  %v1148_v4 = vld [vmem:[#allocation5 + $0x30] sm:$0xff]  ;;  %s842_s13 = sshll.u32 %s1389_s5, 4  ;;  %s843_s13 = int_to_ptr.hbm [resolvable:$true] %s842_s13 }
   0xf   :  { %v1157_v1 = vld [vmem:[#allocation5 + $0x78] sm:$0xff]  ;;  %598 = vmatpush.bf16.msra.mxu0 %v1149_v0  ;;  %v1156_v5 = vld [vmem:[#allocation5 + $0x70] sm:$0xff]  ;;  %v1147_v8 = vld [vmem:[#allocation5 + $0x28] sm:$0xff] }
  0x10   :  { %v1165_v2 = vld [vmem:[#allocation5 + $0xb8] sm:$0xff]  ;;  %611 = vmatpush.bf16.msra.mxu1 %v1157_v1  ;;  %v1164_v6 = vld [vmem:[#allocation5 + $0xb0] sm:$0xff]  ;;  %v1155_v9 = vld [vmem:[#allocation5 + $0x68] sm:$0xff] }
  0x11   :  { %v1173_v3 = vld [vmem:[#allocation5 + $0xf8] sm:$0xff]  ;;  %624 = vmatpush.bf16.msra.mxu2 %v1165_v2  ;;  %v1172_v7 = vld [vmem:[#allocation5 + $0xf0] sm:$0xff]  ;;  %v1163_v10 = vld [vmem:[#allocation5 + $0xa8] sm:$0xff] }
  0x12   :  { %637 = vmatpush.bf16.msra.mxu3 %v1173_v3  ;;  %v1171_v11 = vld [vmem:[#allocation5 + $0xe8] sm:$0xff]  ;;  %v1146_v12 = vld [vmem:[#allocation5 + $0x20] sm:$0xff]  ;;  %v1145_v16 = vld [vmem:[#allocation5 + $0x18] sm:$0xff] }
  0x13   :  { %599 = vmatpush.bf16.msra.mxu0 %v1148_v4  ;;  %v1154_v13 = vld [vmem:[#allocation5 + $0x60] sm:$0xff]  ;;  %v1153_v17 = vld [vmem:[#allocation5 + $0x58] sm:$0xff]  ;;  %v1144_v20 = vld [vmem:[#allocation5 + $0x10] sm:$0xff] }
  0x14   :  { %612 = vmatpush.bf16.msra.mxu1 %v1156_v5  ;;  %v1162_v14 = vld [vmem:[#allocation5 + $0xa0] sm:$0xff]  ;;  %v1161_v18 = vld [vmem:[#allocation5 + $0x98] sm:$0xff]  ;;  %v1152_v21 = vld [vmem:[#allocation5 + $0x50] sm:$0xff] }
  0x15   :  { %625 = vmatpush.bf16.msra.mxu2 %v1164_v6  ;;  %v1170_v15 = vld [vmem:[#allocation5 + $0xe0] sm:$0xff]  ;;  %v1169_v19 = vld [vmem:[#allocation5 + $0xd8] sm:$0xff]  ;;  %v1160_v22 = vld [vmem:[#allocation5 + $0x90] sm:$0xff] }
  0x16   :  { %638 = vmatpush.bf16.msra.mxu3 %v1172_v7  ;;  %v1168_v23 = vld [vmem:[#allocation5 + $0xd0] sm:$0xff]  ;;  %v1143_v24 = vld [vmem:[#allocation5 + $0x8] sm:$0xff]  ;;  %v1142_v28 = vld [vmem:[#allocation5] sm:$0xff] }
  0x17   :  { %600 = vmatpush.bf16.msra.mxu0 %v1147_v8  ;;  %v1151_v25 = vld [vmem:[#allocation5 + $0x48] sm:$0xff]  ;;  %v1150_v29 = vld [vmem:[#allocation5 + $0x40] sm:$0xff]  ;;  %v1181_v32 = vld [vmem:[#allocation5 + $0x138] sm:$0xff] }
  0x18   :  { %613 = vmatpush.bf16.msra.mxu1 %v1155_v9  ;;  %v1159_v26 = vld [vmem:[#allocation5 + $0x88] sm:$0xff]  ;;  %v1158_v30 = vld [vmem:[#allocation5 + $0x80] sm:$0xff]  ;;  %v68_v33 = vld [vmem:[#allocation2 + $0x10] sm:$0xff] }
  0x19   :  { %626 = vmatpush.bf16.msra.mxu2 %v1163_v10  ;;  %v1167_v27 = vld [vmem:[#allocation5 + $0xc8] sm:$0xff]  ;;  %v1166_v31 = vld [vmem:[#allocation5 + $0xc0] sm:$0xff]  ;;  %v1189_v35 = vld [vmem:[#allocation5 + $0x178] sm:$0xff]  ;;  %v76_v40 = vpack.c.bf16 %v68_v33, %v68_v33 }
  0x1a   :  { %639 = vmatpush.bf16.msra.mxu3 %v1171_v11  ;;  %v66_v34 = vld [vmem:[#allocation2] sm:$0xff]  ;;  %v69_v36 = vld [vmem:[#allocation2 + $0x18] sm:$0xff]  ;;  %v67_v37 = vld [vmem:[#allocation2 + $0x8] sm:$0xff] }
  0x1b   :  { %601 = vmatpush.bf16.msra.mxu0 %v1146_v12  ;;  %v1197_v38 = vld [vmem:[#allocation5 + $0x1b8] sm:$0xff]  ;;  %v74_v41 = vpack.c.bf16 %v66_v34, %v66_v34  ;;  %v77_v42 = vpack.c.bf16 %v69_v36, %v69_v36  ;;  %v75_v43 = vpack.c.bf16 %v67_v37, %v67_v37  ;;  %v1180_v44 = vld [vmem:[#allocation5 + $0x130] sm:$0xff]  ;;  %v1179_v48 = vld [vmem:[#allocation5 + $0x128] sm:$0xff] }
  0x1c   :  { %614 = vmatpush.bf16.msra.mxu1 %v1154_v13  ;;  %v1205_v39 = vld [vmem:[#allocation5 + $0x1f8] sm:$0xff]  ;;  %v1188_v45 = vld [vmem:[#allocation5 + $0x170] sm:$0xff]  ;;  %v1187_v49 = vld [vmem:[#allocation5 + $0x168] sm:$0xff] }
  0x1d   :  { %627 = vmatpush.bf16.msra.mxu2 %v1162_v14  ;;  %v1196_v46 = vld [vmem:[#allocation5 + $0x1b0] sm:$0xff]  ;;  %v1195_v50 = vld [vmem:[#allocation5 + $0x1a8] sm:$0xff]  ;;  %v1178_v52 = vld [vmem:[#allocation5 + $0x120] sm:$0xff] }
  0x1e   :  { %640 = vmatpush.bf16.msra.mxu3 %v1170_v15  ;;  %v1204_v47 = vld [vmem:[#allocation5 + $0x1f0] sm:$0xff]  ;;  %v1203_v51 = vld [vmem:[#allocation5 + $0x1e8] sm:$0xff]  ;;  %v1186_v53 = vld [vmem:[#allocation5 + $0x160] sm:$0xff] }
  0x1f   :  { %602 = vmatpush.bf16.msra.mxu0 %v1145_v16  ;;  %v1194_v54 = vld [vmem:[#allocation5 + $0x1a0] sm:$0xff]  ;;  %v1177_v56 = vld [vmem:[#allocation5 + $0x118] sm:$0xff]  ;;  %v1176_v60 = vld [vmem:[#allocation5 + $0x110] sm:$0xff] }
  0x20   :  { %615 = vmatpush.bf16.msra.mxu1 %v1153_v17  ;;  %v1202_v55 = vld [vmem:[#allocation5 + $0x1e0] sm:$0xff]  ;;  %v1185_v57 = vld [vmem:[#allocation5 + $0x158] sm:$0xff]  ;;  %v1184_v61 = vld [vmem:[#allocation5 + $0x150] sm:$0xff] }
  0x21   :  { %628 = vmatpush.bf16.msra.mxu2 %v1161_v18  ;;  %v1193_v58 = vld [vmem:[#allocation5 + $0x198] sm:$0xff]  ;;  %v1192_v62 = vld [vmem:[#allocation5 + $0x190] sm:$0xff]  ;;  %v1175_v0 = vld [vmem:[#allocation5 + $0x108] sm:$0xff] }
  0x22   :  { %641 = vmatpush.bf16.msra.mxu3 %v1169_v19  ;;  %v1201_v59 = vld [vmem:[#allocation5 + $0x1d8] sm:$0xff]  ;;  %v1200_v63 = vld [vmem:[#allocation5 + $0x1d0] sm:$0xff]  ;;  %v1183_v1 = vld [vmem:[#allocation5 + $0x148] sm:$0xff] }
  0x23   :  { %603 = vmatpush.bf16.msra.mxu0 %v1144_v20  ;;  %v1191_v2 = vld [vmem:[#allocation5 + $0x188] sm:$0xff]  ;;  %v1174_v4 = vld [vmem:[#allocation5 + $0x100] sm:$0xff]  ;;  %v72_v10 = vld [vmem:[#allocation2 + $0x30] sm:$0xff] }
  0x24   :  { %616 = vmatpush.bf16.msra.mxu1 %v1152_v21  ;;  %v1199_v3 = vld [vmem:[#allocation5 + $0x1c8] sm:$0xff]  ;;  %v1182_v5 = vld [vmem:[#allocation5 + $0x140] sm:$0xff]  ;;  %v73_v11 = vld [vmem:[#allocation2 + $0x38] sm:$0xff]  ;;  %v80_v14 = vpack.c.bf16 %v72_v10, %v72_v10 }
  0x25   :  { %629 = vmatpush.bf16.msra.mxu2 %v1160_v22  ;;  %v1190_v6 = vld [vmem:[#allocation5 + $0x180] sm:$0xff]  ;;  %v71_v8 = vld [vmem:[#allocation2 + $0x28] sm:$0xff]  ;;  %v81_v15 = vpack.c.bf16 %v73_v11, %v73_v11  ;;  %v1213_v16 = vld [vmem:[#allocation7 + $0x38] sm:$0xff] }
  0x26   :  { %642 = vmatpush.bf16.msra.mxu3 %v1168_v23  ;;  %v70_v7 = vld [vmem:[#allocation2 + $0x20] sm:$0xff]  ;;  %v79_v13 = vpack.c.bf16 %v71_v8, %v71_v8  ;;  %v1212_v17 = vld [vmem:[#allocation7 + $0x30] sm:$0xff]  ;;  %v1211_v18 = vld [vmem:[#allocation7 + $0x28] sm:$0xff] }
  0x27   :  { %604 = vmatpush.bf16.msra.mxu0 %v1143_v24  ;;  %v1198_v9 = vld [vmem:[#allocation5 + $0x1c0] sm:$0xff]  ;;  %v78_v12 = vpack.c.bf16 %v70_v7, %v70_v7  ;;  %v1209_v20 = vld [vmem:[#allocation7 + $0x18] sm:$0xff]  ;;  %v1208_v22 = vld [vmem:[#allocation7 + $0x10] sm:$0xff] }
  0x28   :  { %617 = vmatpush.bf16.msra.mxu1 %v1151_v25  ;;  %v1210_v19 = vld [vmem:[#allocation7 + $0x20] sm:$0xff]  ;;  %v1207_v24 = vld [vmem:[#allocation7 + $0x8] sm:$0xff] }
  0x29   :  { %630 = vmatpush.bf16.msra.mxu2 %v1159_v26 }
  0x2a   :  { %643 = vmatpush.bf16.msra.mxu3 %v1167_v27 }
  0x2b   :  { %605 = vmatpush.bf16.msra.mxu0 %v1142_v28  ;;  %v1206_v28 = vld [vmem:[#allocation7] sm:$0xff] }
  0x2c   :  { %618 = vmatpush.bf16.msra.mxu1 %v1150_v29 }
  0x2d   :  { %631 = vmatpush.bf16.msra.mxu2 %v1158_v30  ;;  %v1220_v30 = vld [vmem:[%s1386_s2] ss:$0 sm:$0xff] }
  0x2e   :  { %644 = vmatpush.bf16.msra.mxu3 %v1166_v31  ;;  %606 = vmatmul.bf16.vlgmr.msra.gmra.mxu0 %v74_v41 }
  0x2f   :  { %650 = vmatpush.bf16.msrb.mxu0 %v1181_v32  ;;  %619 = vmatmul.bf16.vlgmr.msra.gmra.mxu1 %v75_v43 }
  0x30   :  { %663 = vmatpush.bf16.msrb.mxu1 %v1189_v35  ;;  %632 = vmatmul.bf16.vlgmr.msra.gmra.mxu2 %v76_v40 }
  0x31   :  { %676 = vmatpush.bf16.msrb.mxu2 %v1197_v38  ;;  %645 = vmatmul.bf16.vlgmr.msra.gmra.mxu3 %v77_v42 }
  0x32   :  { %689 = vmatpush.bf16.msrb.mxu3 %v1205_v39 }
  0x33   :  { %651 = vmatpush.bf16.msrb.mxu0 %v1180_v44 }
  0x34   :  { %664 = vmatpush.bf16.msrb.mxu1 %v1188_v45 }
  0x35   :  { %677 = vmatpush.bf16.msrb.mxu2 %v1196_v46 }
  0x36   :  { %690 = vmatpush.bf16.msrb.mxu3 %v1204_v47 }
  0x37   :  { %652 = vmatpush.bf16.msrb.mxu0 %v1179_v48 }
  0x38   :  { %665 = vmatpush.bf16.msrb.mxu1 %v1187_v49 }
  0x39   :  { %678 = vmatpush.bf16.msrb.mxu2 %v1195_v50 }
  0x3a   :  { %691 = vmatpush.bf16.msrb.mxu3 %v1203_v51  ;;  %v785_v51 = vlaneseq }
  0x3b   :  { %653 = vmatpush.bf16.msrb.mxu0 %v1178_v52 }
  0x3c   :  { %666 = vmatpush.bf16.msrb.mxu1 %v1186_v53  ;;  %v786_v52 = vand.u32 127, %v785_v51  ;;  %v1221_v53 = vld [vmem:[%s1388_s4] ss:$0 sm:$0xff]  ;;  %s1335_s4 = smov [#allocation8]  }
  0x3d   :  { %679 = vmatpush.bf16.msrb.mxu2 %v1194_v54  ;;  %s840_s10 = sshll.u32 %s1335_s4, 4  ;;  %s841_s10 = int_to_ptr.vmem [resolvable:$true] %s840_s10 }
  0x3e   :  { %692 = vmatpush.bf16.msrb.mxu3 %v1202_v55  ;;  %vm787_vm0 = vcmp.ge.s32.totalorder %v786_v52, 1  ;;  %vm788_vm1 = vcmp.le.s32.totalorder %v786_v52, 8  ;;  %vm829_vm6 = vcmp.eq.s32.totalorder %v786_v52, 3  ;;  %vm828_vm7 = vcmp.eq.s32.totalorder %v786_v52, 2 }
  0x3f   :  { %654 = vmatpush.bf16.msrb.mxu0 %v1177_v56  ;;  %vm789_vm2 = vmand %vm787_vm0, %vm788_vm1  ;;  %vm827_vm8 = vcmp.eq.s32.totalorder %v786_v52, 1  ;;  %vm826_vm9 = vcmp.eq.s32.totalorder %v786_v52, 0 }
  0x40   :  { %667 = vmatpush.bf16.msrb.mxu1 %v1185_v57 }
  0x41   :  { %680 = vmatpush.bf16.msrb.mxu2 %v1193_v58 }
  0x42   :  { %693 = vmatpush.bf16.msrb.mxu3 %v1201_v59 }
  0x43   :  { %655 = vmatpush.bf16.msrb.mxu0 %v1176_v60 }
  0x44   :  { %668 = vmatpush.bf16.msrb.mxu1 %v1184_v61 }
  0x45   :  { %681 = vmatpush.bf16.msrb.mxu2 %v1192_v62 }
  0x46   :  { %694 = vmatpush.bf16.msrb.mxu3 %v1200_v63 }
  0x47   :  { %656 = vmatpush.bf16.msrb.mxu0 %v1175_v0 }
  0x48   :  { %669 = vmatpush.bf16.msrb.mxu1 %v1183_v1 }
  0x49   :  { %682 = vmatpush.bf16.msrb.mxu2 %v1191_v2 }
  0x4a   :  { %695 = vmatpush.bf16.msrb.mxu3 %v1199_v3 }
  0x4b   :  { %657 = vmatpush.bf16.msrb.mxu0 %v1174_v4 }
  0x4c   :  { %670 = vmatpush.bf16.msrb.mxu1 %v1182_v5 }
  0x4d   :  { %683 = vmatpush.bf16.msrb.mxu2 %v1190_v6 }
  0x4e   :  { %696 = vmatpush.bf16.msrb.mxu3 %v1198_v9  ;;  %658 = vmatmul.bf16.vlgmr.msrb.gmra.mxu0 %v78_v12 }
  0x4f   :  { %671 = vmatmul.bf16.vlgmr.msrb.gmra.mxu1 %v79_v13  ;;  %772 = vmatpush.bf16.msra.mxu0 %v1213_v16 }
  0x50   :  { %684 = vmatmul.bf16.vlgmr.msrb.gmra.mxu2 %v80_v14 }
  0x51   :  { %697 = vmatmul.bf16.vlgmr.msrb.gmra.mxu3 %v81_v15 }
  0x53   :  { %773 = vmatpush.bf16.msra.mxu0 %v1212_v17 }
  0x57   :  { %774 = vmatpush.bf16.msra.mxu0 %v1211_v18 }
  0x5b   :  { %775 = vmatpush.bf16.msra.mxu0 %v1210_v19 }
  0x5f   :  { %776 = vmatpush.bf16.msra.mxu0 %v1209_v20 }
  0x63   :  { %777 = vmatpush.bf16.msra.mxu0 %v1208_v22 }
  0x67   :  { %778 = vmatpush.bf16.msra.mxu0 %v1207_v24 }
  0x6b   :  { %779 = vmatpush.bf16.msra.mxu0 %v1206_v28 }
  0xab   :  { %v607_v21 = vpop.f32.mrf.mxu0 }
  0xac   :  { %v620_v23 = vpop.f32.mrf.mxu1  ;;  %v608_v33 = vadd.f32 %v1220_v30, %v607_v21 }
  0xae   :  { %v621_v34 = vadd.f32 %v620_v23, %v608_v33 }
  0xb3   :  { %v633_v25 = vpop.f32.mrf.mxu2  ;;  %v609_v27 = vpop.f32.mrf.mxu0 }
  0xb4   :  { %v646_v26 = vpop.f32.mrf.mxu3  ;;  %v622_v29 = vpop.f32.mrf.mxu1  ;;  %v634_v35 = vadd.f32 %v633_v25, %v621_v34 }
  0xb6   :  { %v647_v36 = vadd.f32 %v646_v26, %v634_v35 }
  0xbb   :  { %v635_v31 = vpop.f32.mrf.mxu2 }
  0xbc   :  { %v648_v32 = vpop.f32.mrf.mxu3 }
  0xcb   :  { %v659_v37 = vpop.f32.mrf.mxu0 }
  0xcc   :  { %v672_v38 = vpop.f32.mrf.mxu1  ;;  %v660_v39 = vadd.f32 %v659_v37, %v647_v36 }
  0xce   :  { %v673_v40 = vadd.f32 %v672_v38, %v660_v39 }
  0xd3   :  { %v685_v41 = vpop.f32.mrf.mxu2  ;;  %v661_v44 = vpop.f32.mrf.mxu0 }
  0xd4   :  { %v698_v42 = vpop.f32.mrf.mxu3  ;;  %v686_v43 = vadd.f32 %v685_v41, %v673_v40  ;;  %v674_v45 = vpop.f32.mrf.mxu1 }
  0xd6   :  { %v699_v46 = vadd.f32 %v698_v42, %v686_v43 }
  0xd8   :  { %v702_v47 = vmax.f32 %v699_v46, 0.0 }
  0xda   :  { %v703_v48 = vpack.c.bf16 %v702_v47, %v702_v47 }
  0xdb   :  { %v687_v49 = vpop.f32.mrf.mxu2 }
  0xdc   :  { %v700_v50 = vpop.f32.mrf.mxu3  ;;  %780 = vmatmul.bf16.vlgmr.msra.gmra.mxu0 %v703_v48 }
 0x159   :  { %v781_v54 = vpop.f32.mrf.mxu0 }
 0x15a   :  { %v782_v55 = vadd.f32 %v1221_v53, %v781_v54 }
 0x15c   :  { %v790_v56 = vsel %vm789_vm2, %v782_v55, -1e+30 }
 0x15d   :  { %791 = vmax.xlane.f32.xlu0 %v790_v56 }
 0x161   :  { %v783_v57 = vpop.f32.mrf.mxu0 }
 0x1d0   :  { %v792_v58 = vpop.xlane.xlu0 %791 }
 0x1d1   :  { %v793_v59 = vsub.f32 %v790_v56, %v792_v58  ;;  %vm800_vm3 = vcmp.eq.f32.partialorder %v790_v56, %v792_v58 }
 0x1d2   :  { %vm801_vm4 = vmand %vm789_vm2, %vm800_vm3 }
 0x1d3   :  { %v794_v60 = vmul.f32 1.442695, %v793_v59  ;;  %v802_v61 = vsel %vm801_vm4, %v786_v52, 128 }
 0x1d4   :  { %v804_v62 = vshra.s32 %v802_v61, 16  ;;  %v803_v2 = vand.u32 65535, %v802_v61 }
 0x1d5   :  { %1222 = vpow2.f32 %v794_v60 }
 0x1d6   :  { %v806_v63 = vcvt.s32.f32 %v804_v62  ;;  %v805_v4 = vcvt.s32.f32 %v803_v2 }
 0x1d8   :  { %807 = vmin.xlane.f32.xlu0 %v806_v63 }
 0x1db   :  { %v1223_v0 = vpop.eup %1222 }
 0x1dc   :  { %796 = vadd.xlane.f32.xlu1 %v1223_v0  ;;  %v820_v1 = vmul.f32 %v1223_v0, %v793_v59 }
 0x1de   :  { %821 = vadd.xlane.f32.xlu2 %v820_v1 }
 0x24b   :  { %v808_v3 = vpop.xlane.xlu0 %807 }
 0x24c   :  { %vm809_vm5 = vcmp.eq.f32.partialorder %v806_v63, %v808_v3  ;;  %v814_v10 = vcvt.f32.s32 %v808_v3 }
 0x24d   :  { %v810_v5 = vsel %vm809_vm5, %v805_v4, inf }
 0x24e   :  { %811 = vmin.xlane.f32.xlu1 %v810_v5  ;;  %v815_v14 = vshll.u32 %v814_v10, 16 }
 0x24f   :  { %v797_v6 = vpop.xlane.xlu1 %796 }
 0x250   :  { %1224 = vlog2.f32 %v797_v6 }
 0x251   :  { %1226 = vrcp.f32 %v797_v6  ;;  %v822_v9 = vpop.xlane.xlu2 %821 }
 0x256   :  { %v1225_v7 = vpop.eup %1224 }
 0x257   :  { %v1227_v8 = vpop.eup %1226  ;;  %v799_v11 = vmul.f32 0.6931472, %v1225_v7 }
 0x258   :  { %v824_v12 = vmul.f32 %v1227_v8, %v822_v9 }
 0x259   :  { %v819_v18 = vsub.f32 0.0, %v799_v11 }
 0x25a   :  { %v825_v15 = vsub.f32 %v799_v11, %v824_v12 }
 0x25c   :  { %v830_v19 = vsel %vm829_vm6, %v825_v15, 0.0 }
 0x25d   :  { %v831_v22 = vsel %vm828_vm7, %v819_v18, %v830_v19 }
 0x2c1   :  { %v812_v13 = vpop.xlane.xlu1 %811 }
 0x2c2   :  { %v813_v16 = vcvt.f32.s32 %v812_v13 }
 0x2c4   :  { %v816_v17 = vadd.s32 %v815_v14, %v813_v16 }
 0x2c6   :  { %v1141_v20 = vadd.s32 4294967295, %v816_v17 }
 0x2c8   :  { %v818_v21 = vcvt.s32.f32 %v1141_v20 }
 0x2ca   :  { %v832_v23 = vsel %vm827_vm8, %v818_v21, %v831_v22 }
 0x2cb   :  { %v833_v24 = vsel %vm826_vm9, %v782_v55, %v832_v23 }
 0x2cc   :  { %834 = vst [vmem:[#allocation8] sm:$0xff] %v833_v24 }
 0x2cd   :  { %845 = dma.vmem_to_hbm [thread:$0]  %s841_s10, 128, %s843_s13, [#allocation4]  }
 0x2ce   :  { %1328 = dma.done.wait [#allocation4], 128  }
 0x2cf   :  { %1329 = vsyncadd [#allocation4], 4294967168 }
 0x2d0   :  { %850 = vsyncpa [#allocation3], 1 }
 0x2d1   :  { %851 = vsyncpa [#allocation6], 1 }
 0x2d2   :  { %852 = vsyncpa [#allocation4], 1 }

// kernel: tpu_custom_call.1
= control target key start
LH: loop header
LB: loop body
LE: loop exit
PB: predicated region body
PF: predicated region fallthrough
CT: control target
= control target key end

     0   :  { %10 = vsyncpa [#allocation3], 0  ;;  %s1384_s0 = inlined_call_operand.hbm [shape: f32[8,1024], index: 0, kind: input, shape index: {}]   ;;  %s1385_s1 = inlined_call_operand.hbm [shape: bf16[1024,128], index: 1, kind: input, shape index: {}]   ;;  %s1386_s2 = inlined_call_operand.vmem [shape: f32[1,128], index: 2, kind: input, shape index: {}]   ;;  %s1387_s3 = inlined_call_operand.hbm [shape: bf16[128,128], index: 3, kind: input, shape index: {}]   ;;  %s1388_s4 = inlined_call_operand.vmem [shape: f32[1,128], index: 4, kind: input, shape index: {}]   ;;  %s1389_s5 = inlined_call_operand.hbm [shape: f32[8,128], index: 5, kind: output, shape index: {}]  }
   0x1   :  { %11 = vsyncpa [#allocation6], 0  ;;  %s28_s20 = sshll.u32 %s1385_s1, 4  ;;  %s29_s20 = int_to_ptr.hbm [resolvable:$true] %s28_s20 }
   0x2   :  { %12 = vsyncpa [#allocation4], 0  ;;  %s1330_s21 = smov [#allocation5]   ;;  %s18_s25 = sshll.u32 %s1384_s0, 4  ;;  %s19_s25 = int_to_ptr.hbm [resolvable:$true] %s18_s25 }
   0x3   :  { %s30_s22 = sshll.u32 %s1330_s21, 4  ;;  %s1331_s26 = smov 64   ;;  %s31_s22 = int_to_ptr.vmem [resolvable:$true] %s30_s22 }
   0x4   :  { %s1332_s27 = smov 4   ;;  %s1333_s28 = smov [#allocation2]  }
   0x5   :  { %36 = dma.hbm_to_vmem [thread:$0]  %s29_s20, 8192, %s31_s22, [#allocation6], %s1331_s26, %s1331_s26, %s1332_s27  }
   0x6   :  { %s20_s29 = sshll.u32 %s1333_s28, 4  ;;  %s43_s7 = sshll.u32 %s1387_s3, 4  ;;  %s21_s29 = int_to_ptr.vmem [resolvable:$true] %s20_s29  ;;  %s44_s7 = int_to_ptr.hbm [resolvable:$true] %s43_s7 }
   0x7   :  { %23 = dma.hbm_to_vmem [thread:$0]  %s19_s25, 1024, %s21_s29, [#allocation3]  }
   0x8   :  { %s1334_s1 = smov [#allocation7]  }
   0x9   :  { %s45_s8 = sshll.u32 %s1334_s1, 4  ;;  %s46_s8 = int_to_ptr.vmem [resolvable:$true] %s45_s8 }
   0xa   :  { %51 = dma.hbm_to_vmem [thread:$0]  %s44_s7, 1024, %s46_s8, [#allocation6], %s1331_s26, %s1331_s26, %s1332_s27  }
   0xb   :  { %1324 = dma.done.wait [#allocation3], 1024  }
   0xc   :  { %1325 = vsyncadd [#allocation3], 4294966272 }
   0xd   :  { %1326 = dma.done.wait [#allocation6], 9216  }
   0xe   :  { %1327 = vsyncadd [#allocation6], 4294958080  ;;  %v1149_v0 = vld [vmem:[#allocation5 + $0x38] sm:$0xff]  ;;  %v1148_v4 = vld [vmem:[#allocation5 + $0x30] sm:$0xff]  ;;  %s842_s13 = sshll.u32 %s1389_s5, 4  ;;  %s843_s13 = int_to_ptr.hbm [resolvable:$true] %s842_s13 }
   0xf   :  { %v1157_v1 = vld [vmem:[#allocation5 + $0x78] sm:$0xff]  ;;  %598 = vmatpush.bf16.msra.mxu0 %v1149_v0  ;;  %v1156_v5 = vld [vmem:[#allocation5 + $0x70] sm:$0xff]  ;;  %v1147_v8 = vld [vmem:[#allocation5 + $0x28] sm:$0xff] }
  0x10   :  { %v1165_v2 = vld [vmem:[#allocation5 + $0xb8] sm:$0xff]  ;;  %611 = vmatpush.bf16.msra.mxu1 %v1157_v1  ;;  %v1164_v6 = vld [vmem:[#allocation5 + $0xb0] sm:$0xff]  ;;  %v1155_v9 = vld [vmem:[#allocation5 + $0x68] sm:$0xff] }
  0x11   :  { %v1173_v3 = vld [vmem:[#allocation5 + $0xf8] sm:$0xff]  ;;  %624 = vmatpush.bf16.msra.mxu2 %v1165_v2  ;;  %v1172_v7 = vld [vmem:[#allocation5 + $0xf0] sm:$0xff]  ;;  %v1163_v10 = vld [vmem:[#allocation5 + $0xa8] sm:$0xff] }
  0x12   :  { %637 = vmatpush.bf16.msra.mxu3 %v1173_v3  ;;  %v1171_v11 = vld [vmem:[#allocation5 + $0xe8] sm:$0xff]  ;;  %v1146_v12 = vld [vmem:[#allocation5 + $0x20] sm:$0xff]  ;;  %v1145_v16 = vld [vmem:[#allocation5 + $0x18] sm:$0xff] }
  0x13   :  { %599 = vmatpush.bf16.msra.mxu0 %v1148_v4  ;;  %v1154_v13 = vld [vmem:[#allocation5 + $0x60] sm:$0xff]  ;;  %v1153_v17 = vld [vmem:[#allocation5 + $0x58] sm:$0xff]  ;;  %v1144_v20 = vld [vmem:[#allocation5 + $0x10] sm:$0xff] }
  0x14   :  { %612 = vmatpush.bf16.msra.mxu1 %v1156_v5  ;;  %v1162_v14 = vld [vmem:[#allocation5 + $0xa0] sm:$0xff]  ;;  %v1161_v18 = vld [vmem:[#allocation5 + $0x98] sm:$0xff]  ;;  %v1152_v21 = vld [vmem:[#allocation5 + $0x50] sm:$0xff] }
  0x15   :  { %625 = vmatpush.bf16.msra.mxu2 %v1164_v6  ;;  %v1170_v15 = vld [vmem:[#allocation5 + $0xe0] sm:$0xff]  ;;  %v1169_v19 = vld [vmem:[#allocation5 + $0xd8] sm:$0xff]  ;;  %v1160_v22 = vld [vmem:[#allocation5 + $0x90] sm:$0xff] }
  0x16   :  { %638 = vmatpush.bf16.msra.mxu3 %v1172_v7  ;;  %v1168_v23 = vld [vmem:[#allocation5 + $0xd0] sm:$0xff]  ;;  %v1143_v24 = vld [vmem:[#allocation5 + $0x8] sm:$0xff]  ;;  %v1142_v28 = vld [vmem:[#allocation5] sm:$0xff] }
  0x17   :  { %600 = vmatpush.bf16.msra.mxu0 %v1147_v8  ;;  %v1151_v25 = vld [vmem:[#allocation5 + $0x48] sm:$0xff]  ;;  %v1150_v29 = vld [vmem:[#allocation5 + $0x40] sm:$0xff]  ;;  %v1181_v32 = vld [vmem:[#allocation5 + $0x138] sm:$0xff] }
  0x18   :  { %613 = vmatpush.bf16.msra.mxu1 %v1155_v9  ;;  %v1159_v26 = vld [vmem:[#allocation5 + $0x88] sm:$0xff]  ;;  %v1158_v30 = vld [vmem:[#allocation5 + $0x80] sm:$0xff]  ;;  %v68_v33 = vld [vmem:[#allocation2 + $0x10] sm:$0xff] }
  0x19   :  { %626 = vmatpush.bf16.msra.mxu2 %v1163_v10  ;;  %v1167_v27 = vld [vmem:[#allocation5 + $0xc8] sm:$0xff]  ;;  %v1166_v31 = vld [vmem:[#allocation5 + $0xc0] sm:$0xff]  ;;  %v1189_v35 = vld [vmem:[#allocation5 + $0x178] sm:$0xff]  ;;  %v76_v40 = vpack.c.bf16 %v68_v33, %v68_v33 }
  0x1a   :  { %639 = vmatpush.bf16.msra.mxu3 %v1171_v11  ;;  %v66_v34 = vld [vmem:[#allocation2] sm:$0xff]  ;;  %v69_v36 = vld [vmem:[#allocation2 + $0x18] sm:$0xff]  ;;  %v67_v37 = vld [vmem:[#allocation2 + $0x8] sm:$0xff] }
  0x1b   :  { %601 = vmatpush.bf16.msra.mxu0 %v1146_v12  ;;  %v1197_v38 = vld [vmem:[#allocation5 + $0x1b8] sm:$0xff]  ;;  %v74_v41 = vpack.c.bf16 %v66_v34, %v66_v34  ;;  %v77_v42 = vpack.c.bf16 %v69_v36, %v69_v36  ;;  %v75_v43 = vpack.c.bf16 %v67_v37, %v67_v37  ;;  %v1180_v44 = vld [vmem:[#allocation5 + $0x130] sm:$0xff]  ;;  %v1179_v48 = vld [vmem:[#allocation5 + $0x128] sm:$0xff] }
  0x1c   :  { %614 = vmatpush.bf16.msra.mxu1 %v1154_v13  ;;  %v1205_v39 = vld [vmem:[#allocation5 + $0x1f8] sm:$0xff]  ;;  %v1188_v45 = vld [vmem:[#allocation5 + $0x170] sm:$0xff]  ;;  %v1187_v49 = vld [vmem:[#allocation5 + $0x168] sm:$0xff] }
  0x1d   :  { %627 = vmatpush.bf16.msra.mxu2 %v1162_v14  ;;  %v1196_v46 = vld [vmem:[#allocation5 + $0x1b0] sm:$0xff]  ;;  %v1195_v50 = vld [vmem:[#allocation5 + $0x1a8] sm:$0xff]  ;;  %v1178_v52 = vld [vmem:[#allocation5 + $0x120] sm:$0xff] }
  0x1e   :  { %640 = vmatpush.bf16.msra.mxu3 %v1170_v15  ;;  %v1204_v47 = vld [vmem:[#allocation5 + $0x1f0] sm:$0xff]  ;;  %v1203_v51 = vld [vmem:[#allocation5 + $0x1e8] sm:$0xff]  ;;  %v1186_v53 = vld [vmem:[#allocation5 + $0x160] sm:$0xff] }
  0x1f   :  { %602 = vmatpush.bf16.msra.mxu0 %v1145_v16  ;;  %v1194_v54 = vld [vmem:[#allocation5 + $0x1a0] sm:$0xff]  ;;  %v1177_v56 = vld [vmem:[#allocation5 + $0x118] sm:$0xff]  ;;  %v1176_v60 = vld [vmem:[#allocation5 + $0x110] sm:$0xff] }
  0x20   :  { %615 = vmatpush.bf16.msra.mxu1 %v1153_v17  ;;  %v1202_v55 = vld [vmem:[#allocation5 + $0x1e0] sm:$0xff]  ;;  %v1185_v57 = vld [vmem:[#allocation5 + $0x158] sm:$0xff]  ;;  %v1184_v61 = vld [vmem:[#allocation5 + $0x150] sm:$0xff] }
  0x21   :  { %628 = vmatpush.bf16.msra.mxu2 %v1161_v18  ;;  %v1193_v58 = vld [vmem:[#allocation5 + $0x198] sm:$0xff]  ;;  %v1192_v62 = vld [vmem:[#allocation5 + $0x190] sm:$0xff]  ;;  %v1175_v0 = vld [vmem:[#allocation5 + $0x108] sm:$0xff] }
  0x22   :  { %641 = vmatpush.bf16.msra.mxu3 %v1169_v19  ;;  %v1201_v59 = vld [vmem:[#allocation5 + $0x1d8] sm:$0xff]  ;;  %v1200_v63 = vld [vmem:[#allocation5 + $0x1d0] sm:$0xff]  ;;  %v1183_v1 = vld [vmem:[#allocation5 + $0x148] sm:$0xff] }
  0x23   :  { %603 = vmatpush.bf16.msra.mxu0 %v1144_v20  ;;  %v1191_v2 = vld [vmem:[#allocation5 + $0x188] sm:$0xff]  ;;  %v1174_v4 = vld [vmem:[#allocation5 + $0x100] sm:$0xff]  ;;  %v72_v10 = vld [vmem:[#allocation2 + $0x30] sm:$0xff] }
  0x24   :  { %616 = vmatpush.bf16.msra.mxu1 %v1152_v21  ;;  %v1199_v3 = vld [vmem:[#allocation5 + $0x1c8] sm:$0xff]  ;;  %v1182_v5 = vld [vmem:[#allocation5 + $0x140] sm:$0xff]  ;;  %v73_v11 = vld [vmem:[#allocation2 + $0x38] sm:$0xff]  ;;  %v80_v14 = vpack.c.bf16 %v72_v10, %v72_v10 }
  0x25   :  { %629 = vmatpush.bf16.msra.mxu2 %v1160_v22  ;;  %v1190_v6 = vld [vmem:[#allocation5 + $0x180] sm:$0xff]  ;;  %v71_v8 = vld [vmem:[#allocation2 + $0x28] sm:$0xff]  ;;  %v81_v15 = vpack.c.bf16 %v73_v11, %v73_v11  ;;  %v1213_v16 = vld [vmem:[#allocation7 + $0x38] sm:$0xff] }
  0x26   :  { %642 = vmatpush.bf16.msra.mxu3 %v1168_v23  ;;  %v70_v7 = vld [vmem:[#allocation2 + $0x20] sm:$0xff]  ;;  %v79_v13 = vpack.c.bf16 %v71_v8, %v71_v8  ;;  %v1212_v17 = vld [vmem:[#allocation7 + $0x30] sm:$0xff]  ;;  %v1211_v18 = vld [vmem:[#allocation7 + $0x28] sm:$0xff] }
  0x27   :  { %604 = vmatpush.bf16.msra.mxu0 %v1143_v24  ;;  %v1198_v9 = vld [vmem:[#allocation5 + $0x1c0] sm:$0xff]  ;;  %v78_v12 = vpack.c.bf16 %v70_v7, %v70_v7  ;;  %v1209_v20 = vld [vmem:[#allocation7 + $0x18] sm:$0xff]  ;;  %v1208_v22 = vld [vmem:[#allocation7 + $0x10] sm:$0xff] }
  0x28   :  { %617 = vmatpush.bf16.msra.mxu1 %v1151_v25  ;;  %v1210_v19 = vld [vmem:[#allocation7 + $0x20] sm:$0xff]  ;;  %v1207_v24 = vld [vmem:[#allocation7 + $0x8] sm:$0xff] }
  0x29   :  { %630 = vmatpush.bf16.msra.mxu2 %v1159_v26 }
  0x2a   :  { %643 = vmatpush.bf16.msra.mxu3 %v1167_v27 }
  0x2b   :  { %605 = vmatpush.bf16.msra.mxu0 %v1142_v28  ;;  %v1206_v28 = vld [vmem:[#allocation7] sm:$0xff] }
  0x2c   :  { %618 = vmatpush.bf16.msra.mxu1 %v1150_v29 }
  0x2d   :  { %631 = vmatpush.bf16.msra.mxu2 %v1158_v30  ;;  %v1220_v30 = vld [vmem:[%s1386_s2] ss:$0 sm:$0xff] }
  0x2e   :  { %644 = vmatpush.bf16.msra.mxu3 %v1166_v31  ;;  %606 = vmatmul.bf16.vlgmr.msra.gmra.mxu0 %v74_v41 }
  0x2f   :  { %650 = vmatpush.bf16.msrb.mxu0 %v1181_v32  ;;  %619 = vmatmul.bf16.vlgmr.msra.gmra.mxu1 %v75_v43 }
  0x30   :  { %663 = vmatpush.bf16.msrb.mxu1 %v1189_v35  ;;  %632 = vmatmul.bf16.vlgmr.msra.gmra.mxu2 %v76_v40 }
  0x31   :  { %676 = vmatpush.bf16.msrb.mxu2 %v1197_v38  ;;  %645 = vmatmul.bf16.vlgmr.msra.gmra.mxu3 %v77_v42 }
  0x32   :  { %689 = vmatpush.bf16.msrb.mxu3 %v1205_v39 }
  0x33   :  { %651 = vmatpush.bf16.msrb.mxu0 %v1180_v44 }
  0x34   :  { %664 = vmatpush.bf16.msrb.mxu1 %v1188_v45 }
  0x35   :  { %677 = vmatpush.bf16.msrb.mxu2 %v1196_v46 }
  0x36   :  { %690 = vmatpush.bf16.msrb.mxu3 %v1204_v47 }
  0x37   :  { %652 = vmatpush.bf16.msrb.mxu0 %v1179_v48 }
  0x38   :  { %665 = vmatpush.bf16.msrb.mxu1 %v1187_v49 }
  0x39   :  { %678 = vmatpush.bf16.msrb.mxu2 %v1195_v50 }
  0x3a   :  { %691 = vmatpush.bf16.msrb.mxu3 %v1203_v51  ;;  %v785_v51 = vlaneseq }
  0x3b   :  { %653 = vmatpush.bf16.msrb.mxu0 %v1178_v52 }
  0x3c   :  { %666 = vmatpush.bf16.msrb.mxu1 %v1186_v53  ;;  %v786_v52 = vand.u32 127, %v785_v51  ;;  %v1221_v53 = vld [vmem:[%s1388_s4] ss:$0 sm:$0xff]  ;;  %s1335_s4 = smov [#allocation8]  }
  0x3d   :  { %679 = vmatpush.bf16.msrb.mxu2 %v1194_v54  ;;  %s840_s10 = sshll.u32 %s1335_s4, 4  ;;  %s841_s10 = int_to_ptr.vmem [resolvable:$true] %s840_s10 }
  0x3e   :  { %692 = vmatpush.bf16.msrb.mxu3 %v1202_v55  ;;  %vm787_vm0 = vcmp.ge.s32.totalorder %v786_v52, 1  ;;  %vm788_vm1 = vcmp.le.s32.totalorder %v786_v52, 8  ;;  %vm829_vm6 = vcmp.eq.s32.totalorder %v786_v52, 3  ;;  %vm828_vm7 = vcmp.eq.s32.totalorder %v786_v52, 2 }
  0x3f   :  { %654 = vmatpush.bf16.msrb.mxu0 %v1177_v56  ;;  %vm789_vm2 = vmand %vm787_vm0, %vm788_vm1  ;;  %vm827_vm8 = vcmp.eq.s32.totalorder %v786_v52, 1  ;;  %vm826_vm9 = vcmp.eq.s32.totalorder %v786_v52, 0 }
  0x40   :  { %667 = vmatpush.bf16.msrb.mxu1 %v1185_v57 }
  0x41   :  { %680 = vmatpush.bf16.msrb.mxu2 %v1193_v58 }
  0x42   :  { %693 = vmatpush.bf16.msrb.mxu3 %v1201_v59 }
  0x43   :  { %655 = vmatpush.bf16.msrb.mxu0 %v1176_v60 }
  0x44   :  { %668 = vmatpush.bf16.msrb.mxu1 %v1184_v61 }
  0x45   :  { %681 = vmatpush.bf16.msrb.mxu2 %v1192_v62 }
  0x46   :  { %694 = vmatpush.bf16.msrb.mxu3 %v1200_v63 }
  0x47   :  { %656 = vmatpush.bf16.msrb.mxu0 %v1175_v0 }
  0x48   :  { %669 = vmatpush.bf16.msrb.mxu1 %v1183_v1 }
  0x49   :  { %682 = vmatpush.bf16.msrb.mxu2 %v1191_v2 }
  0x4a   :  { %695 = vmatpush.bf16.msrb.mxu3 %v1199_v3 }
  0x4b   :  { %657 = vmatpush.bf16.msrb.mxu0 %v1174_v4 }
  0x4c   :  { %670 = vmatpush.bf16.msrb.mxu1 %v1182_v5 }
  0x4d   :  { %683 = vmatpush.bf16.msrb.mxu2 %v1190_v6 }
  0x4e   :  { %696 = vmatpush.bf16.msrb.mxu3 %v1198_v9  ;;  %658 = vmatmul.bf16.vlgmr.msrb.gmra.mxu0 %v78_v12 }
  0x4f   :  { %671 = vmatmul.bf16.vlgmr.msrb.gmra.mxu1 %v79_v13  ;;  %772 = vmatpush.bf16.msra.mxu0 %v1213_v16 }
  0x50   :  { %684 = vmatmul.bf16.vlgmr.msrb.gmra.mxu2 %v80_v14 }
  0x51   :  { %697 = vmatmul.bf16.vlgmr.msrb.gmra.mxu3 %v81_v15 }
  0x53   :  { %773 = vmatpush.bf16.msra.mxu0 %v1212_v17 }
  0x57   :  { %774 = vmatpush.bf16.msra.mxu0 %v1211_v18 }
  0x5b   :  { %775 = vmatpush.bf16.msra.mxu0 %v1210_v19 }
  0x5f   :  { %776 = vmatpush.bf16.msra.mxu0 %v1209_v20 }
  0x63   :  { %777 = vmatpush.bf16.msra.mxu0 %v1208_v22 }
  0x67   :  { %778 = vmatpush.bf16.msra.mxu0 %v1207_v24 }
  0x6b   :  { %779 = vmatpush.bf16.msra.mxu0 %v1206_v28 }
  0xab   :  { %v607_v21 = vpop.f32.mrf.mxu0 }
  0xac   :  { %v620_v23 = vpop.f32.mrf.mxu1  ;;  %v608_v33 = vadd.f32 %v1220_v30, %v607_v21 }
  0xae   :  { %v621_v34 = vadd.f32 %v620_v23, %v608_v33 }
  0xb3   :  { %v633_v25 = vpop.f32.mrf.mxu2  ;;  %v609_v27 = vpop.f32.mrf.mxu0 }
  0xb4   :  { %v646_v26 = vpop.f32.mrf.mxu3  ;;  %v622_v29 = vpop.f32.mrf.mxu1  ;;  %v634_v35 = vadd.f32 %v633_v25, %v621_v34 }
  0xb6   :  { %v647_v36 = vadd.f32 %v646_v26, %v634_v35 }
  0xbb   :  { %v635_v31 = vpop.f32.mrf.mxu2 }
  0xbc   :  { %v648_v32 = vpop.f32.mrf.mxu3 }
  0xcb   :  { %v659_v37 = vpop.f32.mrf.mxu0 }
  0xcc   :  { %v672_v38 = vpop.f32.mrf.mxu1  ;;  %v660_v39 = vadd.f32 %v659_v37, %v647_v36 }
  0xce   :  { %v673_v40 = vadd.f32 %v672_v38, %v660_v39 }
  0xd3   :  { %v685_v41 = vpop.f32.mrf.mxu2  ;;  %v661_v44 = vpop.f32.mrf.mxu0 }
  0xd4   :  { %v698_v42 = vpop.f32.mrf.mxu3  ;;  %v686_v43 = vadd.f32 %v685_v41, %v673_v40  ;;  %v674_v45 = vpop.f32.mrf.mxu1 }
  0xd6   :  { %v699_v46 = vadd.f32 %v698_v42, %v686_v43 }
  0xd8   :  { %v702_v47 = vmax.f32 %v699_v46, 0.0 }
  0xda   :  { %v703_v48 = vpack.c.bf16 %v702_v47, %v702_v47 }
  0xdb   :  { %v687_v49 = vpop.f32.mrf.mxu2 }
  0xdc   :  { %v700_v50 = vpop.f32.mrf.mxu3  ;;  %780 = vmatmul.bf16.vlgmr.msra.gmra.mxu0 %v703_v48 }
 0x159   :  { %v781_v54 = vpop.f32.mrf.mxu0 }
 0x15a   :  { %v782_v55 = vadd.f32 %v1221_v53, %v781_v54 }
 0x15c   :  { %v790_v56 = vsel %vm789_vm2, %v782_v55, -1e+30 }
 0x15d   :  { %791 = vmax.xlane.f32.xlu0 %v790_v56 }
 0x161   :  { %v783_v57 = vpop.f32.mrf.mxu0 }
 0x1d0   :  { %v792_v58 = vpop.xlane.xlu0 %791 }
 0x1d1   :  { %v793_v59 = vsub.f32 %v790_v56, %v792_v58  ;;  %vm800_vm3 = vcmp.eq.f32.partialorder %v790_v56, %v792_v58 }
 0x1d2   :  { %vm801_vm4 = vmand %vm789_vm2, %vm800_vm3 }
 0x1d3   :  { %v794_v60 = vmul.f32 1.442695, %v793_v59  ;;  %v802_v61 = vsel %vm801_vm4, %v786_v52, 128 }
 0x1d4   :  { %v804_v62 = vshra.s32 %v802_v61, 16  ;;  %v803_v2 = vand.u32 65535, %v802_v61 }
 0x1d5   :  { %1222 = vpow2.f32 %v794_v60 }
 0x1d6   :  { %v806_v63 = vcvt.s32.f32 %v804_v62  ;;  %v805_v4 = vcvt.s32.f32 %v803_v2 }
 0x1d8   :  { %807 = vmin.xlane.f32.xlu0 %v806_v63 }
 0x1db   :  { %v1223_v0 = vpop.eup %1222 }
 0x1dc   :  { %796 = vadd.xlane.f32.xlu1 %v1223_v0  ;;  %v820_v1 = vmul.f32 %v1223_v0, %v793_v59 }
 0x1de   :  { %821 = vadd.xlane.f32.xlu2 %v820_v1 }
 0x24b   :  { %v808_v3 = vpop.xlane.xlu0 %807 }
 0x24c   :  { %vm809_vm5 = vcmp.eq.f32.partialorder %v806_v63, %v808_v3  ;;  %v814_v10 = vcvt.f32.s32 %v808_v3 }
 0x24d   :  { %v810_v5 = vsel %vm809_vm5, %v805_v4, inf }
 0x24e   :  { %811 = vmin.xlane.f32.xlu1 %v810_v5  ;;  %v815_v14 = vshll.u32 %v814_v10, 16 }
 0x24f   :  { %v797_v6 = vpop.xlane.xlu1 %796 }
 0x250   :  { %1224 = vlog2.f32 %v797_v6 }
 0x251   :  { %1226 = vrcp.f32 %v797_v6  ;;  %v822_v9 = vpop.xlane.xlu2 %821 }
 0x256   :  { %v1225_v7 = vpop.eup %1224 }
 0x257   :  { %v1227_v8 = vpop.eup %1226  ;;  %v799_v11 = vmul.f32 0.6931472, %v1225_v7 }
 0x258   :  { %v824_v12 = vmul.f32 %v1227_v8, %v822_v9 }
 0x259   :  { %v819_v18 = vsub.f32 0.0, %v799_v11 }
 0x25a   :  { %v825_v15 = vsub.f32 %v799_v11, %v824_v12 }
 0x25c   :  { %v830_v19 = vsel %vm829_vm6, %v825_v15, 0.0 }
 0x25d   :  { %v831_v22 = vsel %vm828_vm7, %v819_v18, %v830_v19 }
 0x2c1   :  { %v812_v13 = vpop.xlane.xlu1 %811 }
 0x2c2   :  { %v813_v16 = vcvt.f32.s32 %v812_v13 }
 0x2c4   :  { %v816_v17 = vadd.s32 %v815_v14, %v813_v16 }
 0x2c6   :  { %v1141_v20 = vadd.s32 4294967295, %v816_v17 }
 0x2c8   :  { %v818_v21 = vcvt.s32.f32 %v1141_v20 }
 0x2ca   :  { %v832_v23 = vsel %vm827_vm8, %v818_v21, %v831_v22 }
 0x2cb   :  { %v833_v24 = vsel %vm826_vm9, %v782_v55, %v832_v23 }
 0x2cc   :  { %834 = vst [vmem:[#allocation8] sm:$0xff] %v833_v24 }
 0x2cd   :  { %845 = dma.vmem_to_hbm [thread:$0]  %s841_s10, 128, %s843_s13, [#allocation4]  }
 0x2ce   :  { %1328 = dma.done.wait [#allocation4], 128  }
 0x2cf   :  { %1329 = vsyncadd [#allocation4], 4294967168 }
 0x2d0   :  { %850 = vsyncpa [#allocation3], 1 }
 0x2d1   :  { %851 = vsyncpa [#allocation6], 1 }
 0x2d2   :  { %852 = vsyncpa [#allocation4], 1 }

</bundles_post_ra>
